<compile_context>
chip_gen: v7x
topology: tpu7x:2x2x1
jax: 0.10.0
libtpu: 0.0.40
codegen_flags: <defaults>
</compile_context>

<pallas_src>
import functools

import jax
import jax.numpy as jnp
from jax.experimental import pallas as pl
from jax.experimental.pallas import tpu as pltpu


def query_att_kernel(q_ref, ref_ref, wq_ref, bq_ref, wr_ref, v_ref, out_ref, *,
                     n_valid):
    tb, n_pad, e = ref_ref.shape

    query = q_ref[...]                       # [TB, E]     (native dtype)
    ref_v = ref_ref[...]                     # [TB, N, E]  (native dtype)
    wq = wq_ref[...]                         # [E, E]      (in x out)
    bq = bq_ref[...]                         # [1, E]
    wr = wr_ref[...]                         # [E, E]      (in x out)
    v = v_ref[...]                           # [1, E]

    # q = W_query(query) + b  -> [TB, E], f32 accumulation on the MXU.
    q = jnp.dot(query, wq, preferred_element_type=jnp.float32) \
        + bq.astype(jnp.float32)

    # r = W_ref(ref): one flat [TB*N, E] x [E, E] MXU matmul.  n_pad is a
    # multiple of the sublane count, so both reshapes are layout-preserving.
    r = jnp.dot(ref_v.reshape(tb * n_pad, e), wr,
                preferred_element_type=jnp.float32).reshape(tb, n_pad, e)

    # m = tanh(q[:, None, :] + r)  (f32 VPU add + EUP tanh).
    # TODO(synk): for very large N*E, tile over N here (chunked r/tanh/logit
    # accumulation or online softmax) instead of holding r and m whole.
    m = jnp.tanh(q[:, None, :] + r)          # [TB, N, E]

    # logits = <m, V> along E, keepdims so E stays in lanes (no squeeze/expand
    # relayout round trip before the pooling broadcast).
    logits = jnp.sum(m * v.astype(jnp.float32), axis=-1,
                     keepdims=True)          # [TB, N, 1]

    if n_valid != n_pad:                     # static check: mask padded nodes
        node = jax.lax.broadcasted_iota(jnp.int32, (tb, n_pad, 1), 1)
        logits = jnp.where(node < n_valid, logits, jnp.float32(-1e30))

    # Numerically stable softmax over nodes (axis=1); exact divide.
    lmax = jnp.max(logits, axis=1, keepdims=True)
    p = jnp.exp(logits - lmax)
    attn = p / jnp.sum(p, axis=1, keepdims=True)   # [TB, N, 1]

    # out = sum_n attn[b, n] * ref[b, n, :]: native-dtype VPU multiply,
    # f32 accumulation in the sublane reduce (no f32 copy of ref).
    pooled = attn.astype(ref_v.dtype) * ref_v
    out = jnp.sum(pooled, axis=1, dtype=jnp.float32)       # [TB, E]

    out_ref[...] = out.astype(out_ref.dtype)  # lane-dense [TB, E] store


def _sublane(itemsize):
    return {4: 8, 2: 16, 1: 32}.get(itemsize, 8)


def _vmem_budget():
    """~3/4 of this generation's physical VMEM (v5e/v6e: ~96 MiB, v7x: ~48 MiB)."""
    try:
        cap = int(pltpu.get_tpu_info().vmem_capacity_bytes)
    except Exception:
        cap = 64 << 20          # conservative (v7x-sized) fallback
    return (cap * 3) // 4


def _pick_block_b(B, n_pad, E, in_bytes, vmem_budget):
    """Largest batch tile that (a) keeps the double-buffered working set inside
    the VMEM budget, (b) divides B and is a multiple of 8 (or falls back to the
    whole batch), and (c) leaves >=2 grid steps when B permits a clean split
    (so both v7x TensorCores get work)."""
    per_row = (2 * (n_pad * E + 2 * E) * in_bytes            # dbl-buf q/ref/out tiles
               + (2 * n_pad * E + 2 * E + 4 * n_pad) * 4)    # f32 r, m, q, out, logits
    resident = 2 * (2 * E * E + 2 * E) * in_bytes            # dbl-buf weights/bias/V
    budget_rows = max((vmem_budget - resident) // per_row, 8)

    cap = budget_rows
    if B % 16 == 0:                  # allow a clean >=2-way split over the batch
        cap = min(cap, B // 2)

    best = 0
    tb = 8
    while tb <= min(B, cap):
        if B % tb == 0:
            best = tb
        tb += 8
    if best == 0:
        best = 8 if (B % 8 == 0 and B >= 8) else B
    return best


def _vmem_limit_bytes(tb, n_pad, E, in_bytes, budget):
    """Accurate working-set estimate x1.2, capped at the generation budget."""
    tiled_io = 2 * (tb * E + tb * n_pad * E + tb * E) * in_bytes   # double-buffered
    weights = 2 * (2 * E * E + 2 * E) * in_bytes                   # double-buffered
    interm = (2 * tb * n_pad * E + 2 * tb * E + 4 * tb * n_pad) * 4
    est = tiled_io + weights + interm
    return int(min(max(est * 6 // 5, 16 << 20), budget))


def prepare_params(params):
    """One-time layout prep (outside the per-call hot path): pre-transpose the
    projection weights to (in x out) and make bias / V lane-dense [1, E] slabs."""
    return {
        "W_query_T": jnp.asarray(params["W_query"].T),
        "b_query": jnp.asarray(params["b_query"])[None, :],
        "W_ref_T": jnp.asarray(params["W_ref"].T),
        "V": jnp.asarray(params["V"])[None, :],
    }


def query_att_batch_forward(query, ref, prepared):
    """query: [B, E], ref: [B, N, E] -> [B, 1, E]."""
    B, E = query.shape
    _, N, _ = ref.shape
    in_bytes = query.dtype.itemsize

    # Pad N up to the sublane count so the in-kernel reshapes are
    # layout-preserving; padded nodes are masked out of the softmax.
    sub = _sublane(in_bytes)
    n_pad = ((N + sub - 1) // sub) * sub
    ref_p = ref if n_pad == N else jnp.pad(ref, ((0, 0), (0, n_pad - N), (0, 0)))

    budget = _vmem_budget()
    tb = _pick_block_b(B, n_pad, E, in_bytes, budget)
    grid = (B // tb,)

    flops = 2 * B * n_pad * E * E + 2 * B * E * E + 4 * B * n_pad * E
    transcendentals = B * n_pad * E + B * n_pad
    bytes_accessed = (2 * B * E + B * n_pad * E + 2 * E * E + 2 * E) * in_bytes
    cost = pl.CostEstimate(flops=flops, transcendentals=transcendentals,
                           bytes_accessed=bytes_accessed)

    out2d = pl.pallas_call(
        functools.partial(query_att_kernel, n_valid=N),
        out_shape=jax.ShapeDtypeStruct((B, E), query.dtype),
        grid_spec=pltpu.PrefetchScalarGridSpec(
            num_scalar_prefetch=0,
            grid=grid,
            in_specs=[
                pl.BlockSpec((tb, E), lambda i: (i, 0)),         # query (tiled)
                pl.BlockSpec((tb, n_pad, E), lambda i: (i, 0, 0)),  # ref (tiled)
                pl.BlockSpec((E, E), lambda i: (0, 0)),          # W_query^T (resident)
                pl.BlockSpec((1, E), lambda i: (0, 0)),          # b_query   (resident)
                pl.BlockSpec((E, E), lambda i: (0, 0)),          # W_ref^T   (resident)
                pl.BlockSpec((1, E), lambda i: (0, 0)),          # V         (resident)
            ],
            out_specs=pl.BlockSpec((tb, E), lambda i: (i, 0)),   # lane-dense [B, E]
        ),
        compiler_params=pltpu.CompilerParams(
            dimension_semantics=("parallel",),
            vmem_limit_bytes=_vmem_limit_bytes(tb, n_pad, E, in_bytes, budget),
        ),
        cost_estimate=cost,
    )(query, ref_p, prepared["W_query_T"], prepared["b_query"],
      prepared["W_ref_T"], prepared["V"])

    return out2d[:, None, :]   # [B, 1, E] reshape outside the kernel


def make_params(key, hidden_size):
    """Deterministic init mirroring the PyTorch module's weight_init."""
    k1, k2, k3, k4 = jax.random.split(key, 4)
    # nn.Linear(hidden, hidden) weight [out, in], std=0.001; bias std=1e-4
    w_query = 0.001 * jax.random.normal(k1, (hidden_size, hidden_size), jnp.float32)
    b_query = 0.0001 * jax.random.normal(k2, (hidden_size,), jnp.float32)
    # nn.Linear(hidden, hidden, bias=False), std=0.001
    w_ref = 0.001 * jax.random.normal(k3, (hidden_size, hidden_size), jnp.float32)
    # V ~ Normal(0, 1e-4)  (weight_init(V) is a no-op since V is not nn.Linear)
    v = 0.0001 * jax.random.normal(k4, (hidden_size,), jnp.float32)
    return {"W_query": w_query, "b_query": b_query, "W_ref": w_ref, "V": v}


def reference_forward(query, ref, params):
    q = query @ params["W_query"].T + params["b_query"]
    r = jnp.einsum("bne,fe->bnf", ref, params["W_ref"])
    m = jnp.tanh(q[:, None, :] + r)
    logits = jnp.einsum("bne,e->bn", m, params["V"])
    attn = jax.nn.softmax(logits, axis=-1)
    return jnp.einsum("bn,bne->be", attn, ref)[:, None, :]


if __name__ == "__main__":
    B, N, E = 2, 8, 32  # batch, n_node, hidden_size

    key = jax.random.PRNGKey(0)
    kq, kr, kp = jax.random.split(key, 3)
    query = jax.random.normal(kq, (B, E), jnp.float32)
    ref = jax.random.normal(kr, (B, N, E), jnp.float32)
    params = make_params(kp, E)
    prepared = prepare_params(params)   # one-time weight transpose / slab prep

    out = query_att_batch_forward(query, ref, prepared)
    out = jax.block_until_ready(out)

    expected = reference_forward(query, ref, params)
    assert out.shape == (B, 1, E)
    # Exact softmax divide + f32 accumulation: tight tolerances hold.
    assert jnp.allclose(out, expected, atol=1e-4, rtol=1e-4)

    print("KERNEL_OK")
</pallas_src>

<mosaic_0001>
module attributes {stable_mosaic.version = 11 : i64} {
  func.func @query_att_kernel(%arg0: i32, %arg1: memref<2x32xf32, #tpu.memory_space<vmem>>, %arg2: memref<2x8x32xf32, #tpu.memory_space<vmem>>, %arg3: memref<32x32xf32, #tpu.memory_space<vmem>>, %arg4: memref<1x32xf32, #tpu.memory_space<vmem>>, %arg5: memref<32x32xf32, #tpu.memory_space<vmem>>, %arg6: memref<1x32xf32, #tpu.memory_space<vmem>>, %arg7: memref<2x32xf32, #tpu.memory_space<vmem>>) attributes {dimension_semantics = [#tpu.dimension_semantics<parallel>], iteration_bounds = array<i64: 1>, scalar_prefetch = 0 : i64, scratch_operands = 0 : i64, tpu.core_type = #tpu.core_type<tc>, window_params = [{transform_indices = @transform_0, window_bounds = array<i64: 2, 32>}, {transform_indices = @transform_1, window_bounds = array<i64: 2, 8, 32>}, {pipeline_mode = #tpu.pipeline_mode<synchronous>, transform_indices = @transform_2, window_bounds = array<i64: 32, 32>}, {pipeline_mode = #tpu.pipeline_mode<synchronous>, transform_indices = @transform_3, window_bounds = array<i64: 1, 32>}, {pipeline_mode = #tpu.pipeline_mode<synchronous>, transform_indices = @transform_4, window_bounds = array<i64: 32, 32>}, {pipeline_mode = #tpu.pipeline_mode<synchronous>, transform_indices = @transform_5, window_bounds = array<i64: 1, 32>}, {transform_indices = @transform_6, window_bounds = array<i64: 2, 32>}]} {
    %c0 = arith.constant 0 : index
    %c0_0 = arith.constant 0 : index
    %0 = vector.load %arg1[%c0, %c0_0] : memref<2x32xf32, #tpu.memory_space<vmem>>, vector<2x32xf32>
    %c0_1 = arith.constant 0 : index
    %c0_2 = arith.constant 0 : index
    %c0_3 = arith.constant 0 : index
    %1 = vector.load %arg2[%c0_1, %c0_2, %c0_3] : memref<2x8x32xf32, #tpu.memory_space<vmem>>, vector<2x8x32xf32>
    %c0_4 = arith.constant 0 : index
    %c0_5 = arith.constant 0 : index
    %2 = vector.load %arg3[%c0_4, %c0_5] : memref<32x32xf32, #tpu.memory_space<vmem>>, vector<32x32xf32>
    %c0_6 = arith.constant 0 : index
    %c0_7 = arith.constant 0 : index
    %3 = vector.load %arg4[%c0_6, %c0_7] : memref<1x32xf32, #tpu.memory_space<vmem>>, vector<1x32xf32>
    %c0_8 = arith.constant 0 : index
    %c0_9 = arith.constant 0 : index
    %4 = vector.load %arg5[%c0_8, %c0_9] : memref<32x32xf32, #tpu.memory_space<vmem>>, vector<32x32xf32>
    %c0_10 = arith.constant 0 : index
    %c0_11 = arith.constant 0 : index
    %5 = vector.load %arg6[%c0_10, %c0_11] : memref<1x32xf32, #tpu.memory_space<vmem>>, vector<1x32xf32>
    %cst = arith.constant dense<0.000000e+00> : vector<2x32xf32>
    %6 = tpu.matmul %0, %2, %cst {dimension_numbers = #tpu.dot_dimension_numbers<[1], [0], [0], [1], [0, 0, 1, 1], [], []>} : vector<2x32xf32>, vector<32x32xf32>, vector<2x32xf32> -> vector<2x32xf32>
    %7 = vector.broadcast %3 : vector<1x32xf32> to vector<2x32xf32>
    %8 = arith.addf %6, %7 : vector<2x32xf32>
    %9 = vector.shape_cast %1 : vector<2x8x32xf32> to vector<16x32xf32>
    %cst_12 = arith.constant dense<0.000000e+00> : vector<16x32xf32>
    %10 = tpu.matmul %9, %4, %cst_12 {dimension_numbers = #tpu.dot_dimension_numbers<[1], [0], [0], [1], [0, 0, 1, 1], [], []>} : vector<16x32xf32>, vector<32x32xf32>, vector<16x32xf32> -> vector<16x32xf32>
    %11 = vector.shape_cast %10 : vector<16x32xf32> to vector<2x8x32xf32>
    %12 = vector.shape_cast %8 : vector<2x32xf32> to vector<2x1x32xf32>
    %13 = vector.broadcast %12 : vector<2x1x32xf32> to vector<2x8x32xf32>
    %14 = arith.addf %13, %11 : vector<2x8x32xf32>
    %15 = math.tanh %14 : vector<2x8x32xf32>
    %16 = vector.shape_cast %5 : vector<1x32xf32> to vector<1x1x32xf32>
    %17 = vector.broadcast %16 : vector<1x1x32xf32> to vector<2x8x32xf32>
    %18 = arith.mulf %15, %17 : vector<2x8x32xf32>
    %cst_13 = arith.constant dense<0.000000e+00> : vector<2x8xf32>
    %19 = vector.multi_reduction <add>, %18, %cst_13 [2] : vector<2x8x32xf32> to vector<2x8xf32>
    %20 = vector.shape_cast %19 : vector<2x8xf32> to vector<2x8x1xf32>
    %cst_14 = arith.constant dense<0xFF800000> : vector<2x1xf32>
    %21 = vector.multi_reduction <maximumf>, %20, %cst_14 [1] : vector<2x8x1xf32> to vector<2x1xf32>
    %22 = vector.shape_cast %21 : vector<2x1xf32> to vector<2x1x1xf32>
    %23 = vector.broadcast %22 : vector<2x1x1xf32> to vector<2x8x1xf32>
    %24 = arith.subf %20, %23 : vector<2x8x1xf32>
    %25 = math.exp %24 : vector<2x8x1xf32>
    %cst_15 = arith.constant dense<0.000000e+00> : vector<2x1xf32>
    %26 = vector.multi_reduction <add>, %25, %cst_15 [1] : vector<2x8x1xf32> to vector<2x1xf32>
    %27 = vector.shape_cast %26 : vector<2x1xf32> to vector<2x1x1xf32>
    %28 = vector.broadcast %27 : vector<2x1x1xf32> to vector<2x8x1xf32>
    %29 = arith.divf %25, %28 : vector<2x8x1xf32>
    %30 = vector.broadcast %29 : vector<2x8x1xf32> to vector<2x8x32xf32>
    %31 = arith.mulf %30, %1 : vector<2x8x32xf32>
    %cst_16 = arith.constant dense<0.000000e+00> : vector<2x32xf32>
    %32 = vector.multi_reduction <add>, %31, %cst_16 [1] : vector<2x8x32xf32> to vector<2x32xf32>
    %c0_17 = arith.constant 0 : index
    %c0_18 = arith.constant 0 : index
    %33 = vector.load %arg7[%c0_17, %c0_18] : memref<2x32xf32, #tpu.memory_space<vmem>>, vector<2x32xf32>
    tpu.vector_store %arg7[%c0_17, %c0_18], %32 {strides = array<i32>} : memref<2x32xf32, #tpu.memory_space<vmem>>, vector<2x32xf32>,
    return
  }
  func.func @transform_0(%arg0: i32) -> (i32, i32) {
    %c0_i32 = arith.constant 0 : i32
    %c0_i32_0 = arith.constant 0 : i32
    return %arg0, %c0_i32 : i32, i32
  }
  func.func @transform_1(%arg0: i32) -> (i32, i32, i32) {
    %c0_i32 = arith.constant 0 : i32
    %c0_i32_0 = arith.constant 0 : i32
    %c0_i32_1 = arith.constant 0 : i32
    return %arg0, %c0_i32, %c0_i32_0 : i32, i32, i32
  }
  func.func @transform_2(%arg0: i32) -> (i32, i32) {
    %c0_i32 = arith.constant 0 : i32
    %c0_i32_0 = arith.constant 0 : i32
    %c0_i32_1 = arith.constant 0 : i32
    return %c0_i32, %c0_i32_0 : i32, i32
  }
  func.func @transform_3(%arg0: i32) -> (i32, i32) {
    %c0_i32 = arith.constant 0 : i32
    %c0_i32_0 = arith.constant 0 : i32
    %c0_i32_1 = arith.constant 0 : i32
    return %c0_i32, %c0_i32_0 : i32, i32
  }
  func.func @transform_4(%arg0: i32) -> (i32, i32) {
    %c0_i32 = arith.constant 0 : i32
    %c0_i32_0 = arith.constant 0 : i32
    %c0_i32_1 = arith.constant 0 : i32
    return %c0_i32, %c0_i32_0 : i32, i32
  }
  func.func @transform_5(%arg0: i32) -> (i32, i32) {
    %c0_i32 = arith.constant 0 : i32
    %c0_i32_0 = arith.constant 0 : i32
    %c0_i32_1 = arith.constant 0 : i32
    return %c0_i32, %c0_i32_0 : i32, i32
  }
  func.func @transform_6(%arg0: i32) -> (i32, i32) {
    %c0_i32 = arith.constant 0 : i32
    %c0_i32_0 = arith.constant 0 : i32
    return %arg0, %c0_i32 : i32, i32
  }
}

</mosaic_0001>

<bundles_post_ra>
// kernel: tpu_custom_call.1
= control target key start
LH: loop header
LB: loop body
LE: loop exit
PB: predicated region body
PF: predicated region fallthrough
CT: control target
= control target key end

     0   :  { %11 = vsyncpa [#allocation3], 0  ;;  %s705_s0 = inlined_call_operand.hbm [shape: f32[2,32], index: 0, kind: input, shape index: {}]   ;;  %s706_s1 = inlined_call_operand.hbm [shape: f32[2,8,32], index: 1, kind: input, shape index: {}]   ;;  %s707_s2 = inlined_call_operand.hbm [shape: f32[32,32], index: 2, kind: input, shape index: {}]   ;;  %s708_s3 = inlined_call_operand.vmem [shape: f32[1,32], index: 3, kind: input, shape index: {}]   ;;  %s709_s4 = inlined_call_operand.hbm [shape: f32[32,32], index: 4, kind: input, shape index: {}]   ;;  %s710_s5 = inlined_call_operand.vmem [shape: f32[1,32], index: 5, kind: input, shape index: {}]   ;;  %s711_s6 = inlined_call_operand.hbm [shape: f32[2,32], index: 6, kind: output, shape index: {}]  }
   0x1   :  { %12 = vsyncpa [#allocation6], 0 }
   0x2   :  { %13 = vsyncpa [#allocation9], 0 }
   0x3   :  { %14 = vsyncpa [#allocation4], 0  ;;  %s569_s21 = smov [#allocation5]   ;;  %s451_s25 = scalar_lea.hbm %s706_s1, 256 }
   0x4   :  { %s30_s22 = sshll.u32 %s569_s21, 4  ;;  %p452_p0 = scmp.ne.s32.totalorder %s706_s1, %s451_s25  ;;  %s31_s22 = int_to_ptr.vmem [resolvable:$true] %s30_s22 }
   0x5   :  { %p455_p1 = scmp.lt.u32.totalorder %s451_s25, %s706_s1 }
   0x7   :  { %p457_p2 = pnand %p455_p1, %p452_p0 }
   0x9   :  { %460 = shalt.err (!%p457_p2)
}
   0xa   :  { %s461_s30 = scalar_lea.vmem %s31_s22, 256  ;;  %p466_p4 = scmp.lt.s32.totalorder %s31_s22, %s31_s22 }
   0xb   :  { %p462_p3 = scmp.ne.s32.totalorder %s31_s22, %s461_s30  ;;  %p467_p5 = scmp.lt.s32.totalorder %s461_s30, %s461_s30 }
   0xd   :  { %p468_p6 = por %p467_p5, %p466_p4 }
   0xf   :  { %p469_p7 = pnand %p468_p6, %p462_p3 }
  0x11   :  { %472 = shalt.err (!%p469_p7)
}
  0x12   :  { %s570_s7 = smov 128   ;;  %s571_s8 = smov 8  }
  0x13   :  { %36 = dma.hbm_to_vmem [thread:$0]  %s706_s1, 256, %s31_s22, [#allocation6], %s570_s7, %s570_s7, %s571_s8  }
  0x14   :  { %s572_s11 = smov [#allocation2]   ;;  %s573_s13 = smov [#allocation7]  }
  0x15   :  { %s21_s12 = sshll.u32 %s572_s11, 4  ;;  %s42_s14 = sshll.u32 %s573_s13, 4  ;;  %s22_s12 = int_to_ptr.vmem [resolvable:$true] %s21_s12  ;;  %s43_s14 = int_to_ptr.vmem [resolvable:$true] %s42_s14 }
  0x16   :  { %s473_s17 = scalar_lea.hbm %s705_s0, 32 }
  0x17   :  { %p474_p8 = scmp.ne.s32.totalorder %s705_s0, %s473_s17  ;;  %p477_p9 = scmp.lt.u32.totalorder %s473_s17, %s705_s0 }
  0x19   :  { %p479_p10 = pnand %p477_p9, %p474_p8 }
  0x1b   :  { %482 = shalt.err (!%p479_p10)
}
  0x1c   :  { %s483_s1 = scalar_lea.vmem %s22_s12, 32  ;;  %p488_p12 = scmp.lt.s32.totalorder %s22_s12, %s22_s12 }
  0x1d   :  { %p484_p11 = scmp.ne.s32.totalorder %s22_s12, %s483_s1  ;;  %p489_p13 = scmp.lt.s32.totalorder %s483_s1, %s483_s1 }
  0x1f   :  { %p490_p0 = por %p489_p13, %p488_p12 }
  0x21   :  { %p491_p1 = pnand %p490_p0, %p484_p11 }
  0x23   :  { %494 = shalt.err (!%p491_p1)
}
  0x24   :  { %24 = dma.hbm_to_vmem [thread:$0]  %s705_s0, 32, %s22_s12, [#allocation3]  }
  0x25   :  { %s495_s26 = scalar_lea.hbm %s707_s2, 512 }
  0x26   :  { %p496_p2 = scmp.ne.s32.totalorder %s707_s2, %s495_s26  ;;  %p499_p3 = scmp.lt.u32.totalorder %s495_s26, %s707_s2 }
  0x28   :  { %p501_p4 = pnand %p499_p3, %p496_p2 }
  0x2a   :  { %504 = shalt.err (!%p501_p4)
}
  0x2b   :  { %s505_s9 = scalar_lea.vmem %s43_s14, 512  ;;  %p510_p6 = scmp.lt.s32.totalorder %s43_s14, %s43_s14 }
  0x2c   :  { %p506_p5 = scmp.ne.s32.totalorder %s43_s14, %s505_s9  ;;  %p511_p7 = scmp.lt.s32.totalorder %s505_s9, %s505_s9 }
  0x2e   :  { %p512_p8 = por %p511_p7, %p510_p6 }
  0x30   :  { %p513_p9 = pnand %p512_p8, %p506_p5 }
  0x32   :  { %516 = shalt.err (!%p513_p9)
}
  0x33   :  { %48 = dma.hbm_to_vmem [thread:$0]  %s707_s2, 512, %s43_s14, [#allocation6], %s570_s7, %s570_s7, %s571_s8  }
  0x34   :  { %s574_s11 = smov [#allocation8]   ;;  %s517_s16 = scalar_lea.hbm %s709_s4, 512 }
  0x35   :  { %s56_s12 = sshll.u32 %s574_s11, 4  ;;  %p518_p10 = scmp.ne.s32.totalorder %s709_s4, %s517_s16  ;;  %s57_s12 = int_to_ptr.vmem [resolvable:$true] %s56_s12 }
  0x36   :  { %p521_p11 = scmp.lt.u32.totalorder %s517_s16, %s709_s4 }
  0x38   :  { %p523_p12 = pnand %p521_p11, %p518_p10 }
  0x3a   :  { %526 = shalt.err (!%p523_p12)
}
  0x3b   :  { %s527_s21 = scalar_lea.vmem %s57_s12, 512  ;;  %p532_p0 = scmp.lt.s32.totalorder %s57_s12, %s57_s12 }
  0x3c   :  { %p528_p13 = scmp.ne.s32.totalorder %s57_s12, %s527_s21  ;;  %p533_p1 = scmp.lt.s32.totalorder %s527_s21, %s527_s21 }
  0x3e   :  { %p534_p2 = por %p533_p1, %p532_p0 }
  0x40   :  { %p535_p3 = pnand %p534_p2, %p528_p13 }
  0x42   :  { %538 = shalt.err (!%p535_p3)
}
  0x43   :  { %62 = dma.hbm_to_vmem [thread:$0]  %s709_s4, 512, %s57_s12, [#allocation9], %s570_s7, %s570_s7, %s571_s8  }
  0x44   :  { %561 = dma.done.wait [#allocation3], 32  }
  0x45   :  { %562 = vsyncadd [#allocation3], 4294967264 }
  0x46   :  { %563 = dma.done.wait [#allocation6], 768  }
  0x47   :  { %564 = vsyncadd [#allocation6], 4294966528 }
  0x48   :  { %565 = dma.done.wait [#allocation9], 512  }
  0x49   :  { %566 = vsyncadd [#allocation9], 4294966784  ;;  %v575_v0 = vmov 0.0|0.0   ;;  %vm576_vm0 = vmmov 0   ;;  %v577_v1 = vmov 0.0   ;;  %v80_v2 = vld [vmem:[#allocation7] sm:$0xff]  ;;  %v255_v19 = vlaneseq }
  0x4a   :  { %414 = vmatprep.subr.bf16.mxu0 %v575_v0  ;;  %400 = vmatprep.mubr.msk.f32.mxu0 %vm576_vm0, %v577_v1  ;;  %v81_v3 = vld [vmem:[#allocation7 + $0x8] sm:$0xff]  ;;  %v82_v4 = vld [vmem:[#allocation7 + $0x10] sm:$0xff]  ;;  %v83_v6 = vld [vmem:[#allocation7 + $0x18] sm:$0xff]  ;;  %vm96_vm1 = vcmask 261120   ;;  %v578_v17 = vmov 1966171168  }
  0x4b   :  { %v415_v5 = vpack.c.bf16 %v81_v3, %v80_v2  ;;  %v85_v7 = vld [vmem:[#allocation8] sm:$0xff]  ;;  %v86_v8 = vld [vmem:[#allocation8 + $0x8] sm:$0xff]  ;;  %v87_v10 = vld [vmem:[#allocation8 + $0x10] sm:$0xff]  ;;  %v418_v12 = vpack.c.bf16 %v83_v6, %v82_v4  ;;  %v253_v18 = vunpack.c.l.s4 %v578_v17  ;;  %v256_v21 = vshrl.u32 %v255_v19, 7 }
  0x4c   :  { %v420_v9 = vpack.c.bf16 %v86_v8, %v85_v7  ;;  %v88_v11 = vld [vmem:[#allocation8 + $0x18] sm:$0xff]  ;;  %v672_v14 = vld [vmem:[#allocation5] sm:$0xff]  ;;  %v77_v15 = vld [vmem:[#allocation2] sm:$0x3]  ;;  %vm354_vm2 = vcmask 1041409   ;;  %vm357_vm3 = vcmask 254976  }
  0x4d   :  { %416 = vmatpush3.bf16.msra.mxu0 %v415_v5  ;;  %v424_v13 = vpack.c.bf16 %v88_v11, %v87_v10  ;;  %411 = vmatprep.mubr.msk.f32.mxu1 %vm96_vm1, %v672_v14  ;;  %v676_v16 = vld [vmem:[#allocation5 + $0x8] sm:$0xff]  ;;  %v254_v20 = vunpack.c.0.s8 %v253_v18  ;;  %v376_v22 = vld [vmem:[%s708_s3] ss:$0 sm:$0xff]  ;;  %v276_v29 = vsub.s32 0, %v256_v21  ;;  %s579_s3 = smov [#allocation10]  }
  0x4e   :  { %417 = vmatprep.subr.bf16.mxu0 %v575_v0  ;;  %421 = vmatprep.subr.bf16.mxu1 %v420_v9  ;;  %v380_v38 = vld [vmem:[%s710_s5] ss:$0 sm:$0xff]  ;;  %s365_s5 = sshll.u32 %s579_s3, 4  ;;  %s366_s5 = int_to_ptr.vmem [resolvable:$true] %s365_s5 }
  0x4f   :  { %423 = vmatpush3.bf16.msra.mxu1 %v420_v9  ;;  %v257_v23 = vsub.s32 %v254_v20, %v256_v21  ;;  %s539_s22 = scalar_lea.vmem %s366_s5, 32  ;;  %p544_p5 = scmp.lt.s32.totalorder %s366_s5, %s366_s5 }
  0x50   :  { %425 = vmatprep.subr.bf16.mxu1 %v424_v13  ;;  %p540_p4 = scmp.ne.s32.totalorder %s366_s5, %s539_s22  ;;  %p545_p6 = scmp.lt.s32.totalorder %s539_s22, %s539_s22 }
  0x51   :  { %419 = vmatpush3.bf16.msra.mxu0 %v418_v12 }
  0x52   :  { %p546_p7 = por %p545_p6, %p544_p5 }
  0x53   :  { %427 = vmatpush3.bf16.msra.mxu1 %v424_v13 }
  0x54   :  { %401 = vmatmul.mubr.msk.f32.vlgmr.msra.gmra.mrb[0].mxu0 %vm96_vm1, %v77_v15  ;;  %p547_p8 = pnand %p546_p7, %p540_p4 }
  0x56   :  { %412 = vmatmul.mubr.msk.f32.vlgmr.msra.gmra.mrb[0].mxu1 %vm96_vm1, %v676_v16 }
 0x127   :  { %v166_v24 = vpop.f32.mrb[0].mxu0 }
 0x128   :  { %v167_v25 = vadd.f32 %v376_v22, %v166_v24  ;;  %v402_v26 = vpop.f32.mrb[1].mxu0 }
 0x129   :  { %v413_v27 = vpop.f32.mrb[0].mxu1 }
 0x12a   :  { %v258_v28 = vrot.slane %v167_v25, %v257_v23  ;;  %v242_v30 = vpop.f32.mrb[1].mxu1 }
 0x12c   :  { %v259_v31 = vcombine.high %v258_v28, %v258_v28  ;;  %v266_v32 = vrot.slane %v258_v28, %v257_v23 }
 0x12e   :  { %v273_v33 = vrot.slane %v259_v31, %v257_v23  ;;  %v277_v34 = vrot.slane %v266_v32, %v276_v29 }
 0x130   :  { %v281_v35 = vrot.slane %v273_v33, %v276_v29  ;;  %v284_v36 = vadd.f32 %v277_v34, %v242_v30 }
 0x132   :  { %v285_v37 = vadd.f32 %v413_v27, %v281_v35  ;;  %439 = vtanh.f32 %v284_v36 }
 0x134   :  { %441 = vtanh.f32 %v285_v37 }
 0x13c   :  { %v440_v39 = vpop.eup %439 }
 0x13d   :  { %v294_v40 = vmul.f32 %v440_v39, %v380_v38 }
 0x13e   :  { %v442_v41 = vpop.eup %441 }
 0x13f   :  { %v296_v42 = vsel %vm96_vm1, %v294_v40, 0.0  ;;  %v295_v43 = vmul.f32 %v442_v41, %v380_v38 }
 0x140   :  { %297 = vadd.xlane.f32.xlu0 %v296_v42 }
 0x141   :  { %v299_v44 = vsel %vm96_vm1, %v295_v43, 0.0 }
 0x144   :  { %300 = vadd.xlane.f32.xlu0 %v299_v44 }
 0x1cd   :  { %v298_v45 = vpop.xlane.xlu0 %297 }
 0x1ce   :  { %v302_v46 = vrot.slane %v298_v45, 4 }
 0x1d0   :  { %v303_v47 = vmax.f32 %v298_v45, %v302_v46 }
 0x1d1   :  { %v301_v48 = vpop.xlane.xlu0 %300 }
 0x1d2   :  { %v304_v49 = vrot.slane %v303_v47, 2  ;;  %v308_v50 = vrot.slane %v301_v48, 4 }
 0x1d4   :  { %v305_v51 = vmax.f32 %v303_v47, %v304_v49  ;;  %v309_v52 = vmax.f32 %v301_v48, %v308_v50 }
 0x1d6   :  { %v306_v53 = vrot.slane %v305_v51, 1  ;;  %v310_v54 = vrot.slane %v309_v52, 2 }
 0x1d8   :  { %v307_v55 = vmax.f32 %v305_v51, %v306_v53  ;;  %v311_v56 = vmax.f32 %v309_v52, %v310_v54 }
 0x1da   :  { %v314_v57 = vsub.f32 %v298_v45, %v307_v55  ;;  %v312_v58 = vrot.slane %v311_v56, 1 }
 0x1dc   :  { %v316_v59 = vmul.f32 1.442695, %v314_v57  ;;  %v313_v60 = vmax.f32 %v311_v56, %v312_v58 }
 0x1de   :  { %443 = vpow2.f32 %v316_v59  ;;  %v315_v61 = vsub.f32 %v301_v48, %v313_v60 }
 0x1e0   :  { %v318_v62 = vmul.f32 1.442695, %v315_v61 }
 0x1e2   :  { %445 = vpow2.f32 %v318_v62 }
 0x1e8   :  { %v444_v63 = vpop.eup %443 }
 0x1e9   :  { %v320_v0 = vrot.slane %v444_v63, 4 }
 0x1eb   :  { %v321_v1 = vadd.f32 %v444_v63, %v320_v0 }
 0x1ec   :  { %v446_v2 = vpop.eup %445 }
 0x1ed   :  { %v322_v3 = vrot.slane %v321_v1, 2  ;;  %v326_v4 = vrot.slane %v446_v2, 4 }
 0x1ef   :  { %v327_v5 = vadd.f32 %v446_v2, %v326_v4  ;;  %v323_v6 = vadd.f32 %v322_v3, %v321_v1 }
 0x1f1   :  { %v328_v7 = vrot.slane %v327_v5, 2  ;;  %v324_v8 = vrot.slane %v323_v6, 1 }
 0x1f3   :  { %v329_v9 = vadd.f32 %v328_v7, %v327_v5  ;;  %v325_v10 = vadd.f32 %v324_v8, %v323_v6 }
 0x1f5   :  { %v330_v11 = vrot.slane %v329_v9, 1  ;;  %447 = vrcp.f32 %v325_v10 }
 0x1f7   :  { %v331_v12 = vadd.f32 %v330_v11, %v329_v9 }
 0x1f9   :  { %449 = vrcp.f32 %v331_v12 }
 0x1ff   :  { %v448_v13 = vpop.eup %447 }
 0x200   :  { %v333_v15 = vmul.f32 %v448_v13, %v444_v63 }
 0x202   :  { %v336_v17 = vmul.f32 %v333_v15, %v672_v14 }
 0x203   :  { %v450_v18 = vpop.eup %449 }
 0x204   :  { %v335_v19 = vmul.f32 %v450_v18, %v446_v2  ;;  %v338_v20 = vsel %vm96_vm1, %v336_v17, 0.0 }
 0x205   :  { %v339_v21 = vrot.slane %v338_v20, 4 }
 0x206   :  { %v337_v22 = vmul.f32 %v335_v19, %v676_v16 }
 0x207   :  { %v340_v23 = vadd.f32 %v339_v21, %v338_v20 }
 0x208   :  { %v345_v24 = vsel %vm96_vm1, %v337_v22, 0.0 }
 0x209   :  { %v341_v25 = vrot.slane %v340_v23, 2  ;;  %v346_v26 = vrot.slane %v345_v24, 4 }
 0x20b   :  { %v342_v27 = vadd.f32 %v341_v25, %v340_v23  ;;  %v347_v28 = vadd.f32 %v346_v26, %v345_v24 }
 0x20d   :  { %v348_v29 = vrot.slane %v347_v28, 2  ;;  %v343_v30 = vrot.slane %v342_v27, 1 }
 0x20f   :  { %v349_v31 = vadd.f32 %v348_v29, %v347_v28  ;;  %v344_v14 = vadd.f32 %v343_v30, %v342_v27 }
 0x211   :  { %v350_v32 = vrot.slane %v349_v31, 1 }
 0x213   :  { %v351_v33 = vadd.f32 %v350_v32, %v349_v31 }
 0x215   :  { %v355_v34 = vsel %vm354_vm2, %v351_v33, %v344_v14 }
 0x216   :  { %358 = vst.msk [vmem:[#allocation10] sm:$0x3] %vm357_vm3, %v355_v34 }
 0x217   :  { %550 = shalt.err (!%p547_p8)
}
 0x218   :  { %s551_s25 = scalar_lea.hbm %s711_s6, 32 }
 0x219   :  { %p552_p9 = scmp.ne.s32.totalorder %s711_s6, %s551_s25  ;;  %p555_p10 = scmp.lt.u32.totalorder %s551_s25, %s711_s6 }
 0x21b   :  { %p557_p11 = pnand %p555_p10, %p552_p9 }
 0x21d   :  { %560 = shalt.err (!%p557_p11)
}
 0x21e   :  { %368 = dma.vmem_to_hbm [thread:$0]  %s366_s5, 32, %s711_s6, [#allocation4]  }
 0x21f   :  { %567 = dma.done.wait [#allocation4], 32  }
 0x220   :  { %568 = vsyncadd [#allocation4], 4294967264 }
 0x221   :  { %372 = vsyncpa [#allocation3], 1 }
 0x222   :  { %373 = vsyncpa [#allocation6], 1 }
 0x223   :  { %374 = vsyncpa [#allocation9], 1 }
 0x224   :  { %375 = vsyncpa [#allocation4], 1 }

</bundles_post_ra>
